<compile_context>
chip_gen: v6e
topology: v6e:2x2x1
jax: 0.10.0
libtpu: 0.0.40
codegen_flags: <defaults>
</compile_context>

<pallas_src>
import functools

import jax
import jax.numpy as jnp
from jax.experimental import pallas as pl
from jax.experimental.pallas import tpu as pltpu

N_LAYERS = 4
LANE = 128


def _round_up(x, m):
    return (x + m - 1) // m * m


def dqn_kernel(x_ref, w_ref, b_ref, out_ref, *, in_pad):
    """x_ref: (TB, in_pad) compute dtype; w_ref: (L, D, D) compute dtype;
    b_ref: (L, 1, D) f32; out_ref: (TB, D) f32, lane-dense."""
    compute_dtype = w_ref.dtype

    # fc1: contract over the true (sublane-aligned) input width.  Any padded
    # input lanes hit zero rows of w_slab, so no masking is needed.
    h = x_ref[...].astype(compute_dtype)
    acc = jnp.dot(h, w_ref[0][:in_pad, :], preferred_element_type=jnp.float32)
    acc = jnp.maximum(acc + b_ref[0], 0.0)          # f32 epilogue (v5e-safe)
    h = acc.astype(compute_dtype)

    # fc2 / fc3: full DxD matmuls.  Dropout after fc2 is identity in eval mode.
    for i in range(1, N_LAYERS - 1):
        acc = jnp.dot(h, w_ref[i], preferred_element_type=jnp.float32)
        acc = jnp.maximum(acc + b_ref[i], 0.0)
        h = acc.astype(compute_dtype)

    # fc4 (no activation), stored lane-dense; real Q columns sliced in wrapper.
    out = jnp.dot(h, w_ref[N_LAYERS - 1],
                  preferred_element_type=jnp.float32) + b_ref[N_LAYERS - 1]
    out_ref[...] = out.astype(out_ref.dtype)


def dqn_forward(x, w_slab, b_slab, *, output_size, max_batch_tile=512):
    """x: (batch, input_size) f32. w_slab: (L, D, D). b_slab: (L, 1, D) f32."""
    batch, in_size = x.shape
    n_layers, d_pad, _ = w_slab.shape
    compute_dtype = w_slab.dtype

    # Pad the input feature dim only up to the dtype's sublane packing so the
    # fc1 weight slice stays tile-aligned (16 rows for bf16, 8 for f32).
    pack = 8 * (4 // jnp.dtype(compute_dtype).itemsize)
    in_pad = _round_up(in_size, pack)
    assert in_pad <= d_pad

    # Batch tiling: >= 2 grid steps when batch >= 16 (v7x megacore engages);
    # tile sized so padding waste is bounded by < 8 rows per tile.
    n_tiles = pl.cdiv(batch, max_batch_tile)
    if batch >= 16:
        n_tiles = max(n_tiles, 2)
    tb = min(max_batch_tile, _round_up(pl.cdiv(batch, n_tiles), 8))
    padded_batch = n_tiles * tb

    # Tiny pad (batch rows to the grid, features to the sublane pack); fuses
    # with the dtype cast under jit -- no (padded_batch, 128) HBM round trip.
    x_in = jnp.pad(x.astype(compute_dtype),
                   ((0, padded_batch - batch), (0, in_pad - in_size)))

    out = pl.pallas_call(
        functools.partial(dqn_kernel, in_pad=in_pad),
        out_shape=jax.ShapeDtypeStruct((padded_batch, d_pad), jnp.float32),
        grid=(n_tiles,),
        in_specs=[
            # Activations: one batch tile per grid step, true feature width.
            pl.BlockSpec((tb, in_pad), lambda i: (i, 0)),
            # Weights / biases: full-array block, constant index_map
            # -> fetched once, VMEM-resident across all grid steps.
            pl.BlockSpec((n_layers, d_pad, d_pad), lambda i: (0, 0, 0)),
            pl.BlockSpec((n_layers, 1, d_pad), lambda i: (0, 0, 0)),
        ],
        out_specs=pl.BlockSpec((tb, d_pad), lambda i: (i, 0)),
        compiler_params=pltpu.CompilerParams(
            dimension_semantics=("parallel",)),  # shard batch over 2 TCs (v7x)
    )(x_in, w_slab, b_slab)

    # Slice real rows and real Q-value columns (output was stored lane-dense).
    return out[:batch, :output_size]


def init_dqn_params(key, input_size, hidden_size, output_size):
    """PyTorch-style nn.Linear init U(-1/sqrt(fan_in), 1/sqrt(fan_in));
    weights stored (in, out), biases (1, out)."""
    dims = [(input_size, hidden_size),
            (hidden_size, hidden_size),
            (hidden_size, hidden_size // 2),
            (hidden_size // 2, output_size)]
    params = {}
    for i, (fan_in, fan_out) in enumerate(dims, start=1):
        key, kw, kb = jax.random.split(key, 3)
        bound = 1.0 / (fan_in ** 0.5)
        params[f"w{i}"] = jax.random.uniform(
            kw, (fan_in, fan_out), jnp.float32, minval=-bound, maxval=bound)
        params[f"b{i}"] = jax.random.uniform(
            kb, (1, fan_out), jnp.float32, minval=-bound, maxval=bound)
    return params, dims


def pack_params(params, dims, *, compute_dtype=jnp.bfloat16):
    """Zero-pad every layer to (D, D) with D = round_up(max dim, 128) and stack
    into two slabs: weights (L, D, D) in compute dtype (bf16 default), biases
    (L, 1, D) kept in f32 (added post-accumulation)."""
    d_pad = _round_up(max(max(d) for d in dims), LANE)
    w_slab = jnp.zeros((len(dims), d_pad, d_pad), jnp.float32)
    b_slab = jnp.zeros((len(dims), 1, d_pad), jnp.float32)
    for i, (fan_in, fan_out) in enumerate(dims, start=1):
        w_slab = w_slab.at[i - 1, :fan_in, :fan_out].set(params[f"w{i}"])
        b_slab = b_slab.at[i - 1, 0, :fan_out].set(params[f"b{i}"][0])
    return w_slab.astype(compute_dtype), b_slab


def dqn_ref(x, p):
    """Plain-JAX reference (eval-mode forward), high-precision matmuls."""
    dot = functools.partial(jnp.matmul, precision=jax.lax.Precision.HIGHEST)
    h = jnp.maximum(dot(x, p["w1"]) + p["b1"], 0.0)
    h = jnp.maximum(dot(h, p["w2"]) + p["b2"], 0.0)
    h = jnp.maximum(dot(h, p["w3"]) + p["b3"], 0.0)
    return dot(h, p["w4"]) + p["b4"]


if __name__ == "__main__":
    # Small shapes consistent with a snake-game DQN: state vec -> Q values.
    batch = 8
    input_size = 32
    hidden_size = 64
    output_size = 4

    key = jax.random.PRNGKey(0)
    key, kx = jax.random.split(key)
    x = jax.random.normal(kx, (batch, input_size), jnp.float32)
    params, dims = init_dqn_params(key, input_size, hidden_size, output_size)
    ref = dqn_ref(x, params)

    fwd = jax.jit(dqn_forward,
                  static_argnames=("output_size", "max_batch_tile"))

    # Default bf16 compute path (f32 accumulate + f32 epilogue).
    w_bf, b_bf = pack_params(params, dims)
    out_bf = jax.block_until_ready(fwd(x, w_bf, b_bf, output_size=output_size))
    assert out_bf.shape == (batch, output_size)
    assert jnp.allclose(out_bf, ref, atol=1e-1, rtol=1e-1)

    # f32 compute path: near-exact match against the reference.
    w32, b32 = pack_params(params, dims, compute_dtype=jnp.float32)
    out_32 = jax.block_until_ready(fwd(x, w32, b32, output_size=output_size))
    assert out_32.shape == (batch, output_size)
    assert jnp.allclose(out_32, ref, atol=1e-4, rtol=1e-4)

    # Multi-tile path: batch >= 16 -> grid has >= 2 steps (v7x megacore) with
    # tail padding bounded by < 8 rows per tile.
    batch2 = 48
    key, kx2 = jax.random.split(key)
    x2 = jax.random.normal(kx2, (batch2, input_size), jnp.float32)
    ref2 = dqn_ref(x2, params)
    out2 = jax.block_until_ready(fwd(x2, w_bf, b_bf, output_size=output_size))
    assert out2.shape == (batch2, output_size)
    assert jnp.allclose(out2, ref2, atol=1e-1, rtol=1e-1)

    print("KERNEL_OK")
</pallas_src>

<mosaic_0001>
module attributes {stable_mosaic.version = 11 : i64} {
  func.func @dqn_kernel(%arg0: i32, %arg1: memref<8x32xbf16, #tpu.memory_space<vmem>>, %arg2: memref<4x128x128xbf16, #tpu.memory_space<vmem>>, %arg3: memref<4x1x128xf32, #tpu.memory_space<vmem>>, %arg4: memref<8x128xf32, #tpu.memory_space<vmem>>) attributes {dimension_semantics = [#tpu.dimension_semantics<parallel>], iteration_bounds = array<i64: 1>, scalar_prefetch = 0 : i64, scratch_operands = 0 : i64, tpu.core_type = #tpu.core_type<tc>, window_params = [{transform_indices = @transform_0, window_bounds = array<i64: 8, 32>}, {pipeline_mode = #tpu.pipeline_mode<synchronous>, transform_indices = @transform_1, window_bounds = array<i64: 4, 128, 128>}, {pipeline_mode = #tpu.pipeline_mode<synchronous>, transform_indices = @transform_2, window_bounds = array<i64: 4, 1, 128>}, {transform_indices = @transform_3, window_bounds = array<i64: 8, 128>}]} {
    %c0 = arith.constant 0 : index
    %c0_0 = arith.constant 0 : index
    %0 = vector.load %arg1[%c0, %c0_0] : memref<8x32xbf16, #tpu.memory_space<vmem>>, vector<8x32xbf16>
    %c0_1 = arith.constant 0 : index
    %c0_2 = arith.constant 0 : index
    %c0_3 = arith.constant 0 : index
    %1 = vector.load %arg2[%c0_1, %c0_2, %c0_3] : memref<4x128x128xbf16, #tpu.memory_space<vmem>>, vector<1x128x128xbf16>
    %2 = vector.shape_cast %1 : vector<1x128x128xbf16> to vector<128x128xbf16>
    %3 = vector.extract_strided_slice %2 {offsets = [0, 0], sizes = [32, 128], strides = [1, 1]} : vector<128x128xbf16> to vector<32x128xbf16>
    %cst = arith.constant dense<0.000000e+00> : vector<8x128xf32>
    %4 = tpu.matmul %0, %3, %cst {dimension_numbers = #tpu.dot_dimension_numbers<[1], [0], [0], [1], [0, 0, 1, 1], [], []>} : vector<8x32xbf16>, vector<32x128xbf16>, vector<8x128xf32> -> vector<8x128xf32>
    %c0_4 = arith.constant 0 : index
    %c0_5 = arith.constant 0 : index
    %c0_6 = arith.constant 0 : index
    %5 = vector.load %arg3[%c0_4, %c0_5, %c0_6] : memref<4x1x128xf32, #tpu.memory_space<vmem>>, vector<1x1x128xf32>
    %6 = vector.shape_cast %5 : vector<1x1x128xf32> to vector<1x128xf32>
    %7 = vector.broadcast %6 : vector<1x128xf32> to vector<8x128xf32>
    %8 = arith.addf %4, %7 : vector<8x128xf32>
    %cst_7 = arith.constant 0.000000e+00 : f32
    %9 = vector.broadcast %cst_7 : f32 to vector<8x128xf32>
    %10 = arith.maximumf %8, %9 : vector<8x128xf32>
    %11 = arith.truncf %10 : vector<8x128xf32> to vector<8x128xbf16>
    %c1 = arith.constant 1 : index
    %c0_8 = arith.constant 0 : index
    %c0_9 = arith.constant 0 : index
    %12 = vector.load %arg2[%c1, %c0_8, %c0_9] : memref<4x128x128xbf16, #tpu.memory_space<vmem>>, vector<1x128x128xbf16>
    %13 = vector.shape_cast %12 : vector<1x128x128xbf16> to vector<128x128xbf16>
    %cst_10 = arith.constant dense<0.000000e+00> : vector<8x128xf32>
    %14 = tpu.matmul %11, %13, %cst_10 {dimension_numbers = #tpu.dot_dimension_numbers<[1], [0], [0], [1], [0, 0, 1, 1], [], []>} : vector<8x128xbf16>, vector<128x128xbf16>, vector<8x128xf32> -> vector<8x128xf32>
    %c1_11 = arith.constant 1 : index
    %c0_12 = arith.constant 0 : index
    %c0_13 = arith.constant 0 : index
    %15 = vector.load %arg3[%c1_11, %c0_12, %c0_13] : memref<4x1x128xf32, #tpu.memory_space<vmem>>, vector<1x1x128xf32>
    %16 = vector.shape_cast %15 : vector<1x1x128xf32> to vector<1x128xf32>
    %17 = vector.broadcast %16 : vector<1x128xf32> to vector<8x128xf32>
    %18 = arith.addf %14, %17 : vector<8x128xf32>
    %cst_14 = arith.constant 0.000000e+00 : f32
    %19 = vector.broadcast %cst_14 : f32 to vector<8x128xf32>
    %20 = arith.maximumf %18, %19 : vector<8x128xf32>
    %21 = arith.truncf %20 : vector<8x128xf32> to vector<8x128xbf16>
    %c2 = arith.constant 2 : index
    %c0_15 = arith.constant 0 : index
    %c0_16 = arith.constant 0 : index
    %22 = vector.load %arg2[%c2, %c0_15, %c0_16] : memref<4x128x128xbf16, #tpu.memory_space<vmem>>, vector<1x128x128xbf16>
    %23 = vector.shape_cast %22 : vector<1x128x128xbf16> to vector<128x128xbf16>
    %cst_17 = arith.constant dense<0.000000e+00> : vector<8x128xf32>
    %24 = tpu.matmul %21, %23, %cst_17 {dimension_numbers = #tpu.dot_dimension_numbers<[1], [0], [0], [1], [0, 0, 1, 1], [], []>} : vector<8x128xbf16>, vector<128x128xbf16>, vector<8x128xf32> -> vector<8x128xf32>
    %c2_18 = arith.constant 2 : index
    %c0_19 = arith.constant 0 : index
    %c0_20 = arith.constant 0 : index
    %25 = vector.load %arg3[%c2_18, %c0_19, %c0_20] : memref<4x1x128xf32, #tpu.memory_space<vmem>>, vector<1x1x128xf32>
    %26 = vector.shape_cast %25 : vector<1x1x128xf32> to vector<1x128xf32>
    %27 = vector.broadcast %26 : vector<1x128xf32> to vector<8x128xf32>
    %28 = arith.addf %24, %27 : vector<8x128xf32>
    %cst_21 = arith.constant 0.000000e+00 : f32
    %29 = vector.broadcast %cst_21 : f32 to vector<8x128xf32>
    %30 = arith.maximumf %28, %29 : vector<8x128xf32>
    %31 = arith.truncf %30 : vector<8x128xf32> to vector<8x128xbf16>
    %c3 = arith.constant 3 : index
    %c0_22 = arith.constant 0 : index
    %c0_23 = arith.constant 0 : index
    %32 = vector.load %arg2[%c3, %c0_22, %c0_23] : memref<4x128x128xbf16, #tpu.memory_space<vmem>>, vector<1x128x128xbf16>
    %33 = vector.shape_cast %32 : vector<1x128x128xbf16> to vector<128x128xbf16>
    %cst_24 = arith.constant dense<0.000000e+00> : vector<8x128xf32>
    %34 = tpu.matmul %31, %33, %cst_24 {dimension_numbers = #tpu.dot_dimension_numbers<[1], [0], [0], [1], [0, 0, 1, 1], [], []>} : vector<8x128xbf16>, vector<128x128xbf16>, vector<8x128xf32> -> vector<8x128xf32>
    %c3_25 = arith.constant 3 : index
    %c0_26 = arith.constant 0 : index
    %c0_27 = arith.constant 0 : index
    %35 = vector.load %arg3[%c3_25, %c0_26, %c0_27] : memref<4x1x128xf32, #tpu.memory_space<vmem>>, vector<1x1x128xf32>
    %36 = vector.shape_cast %35 : vector<1x1x128xf32> to vector<1x128xf32>
    %37 = vector.broadcast %36 : vector<1x128xf32> to vector<8x128xf32>
    %38 = arith.addf %34, %37 : vector<8x128xf32>
    %c0_28 = arith.constant 0 : index
    %c0_29 = arith.constant 0 : index
    %39 = vector.load %arg4[%c0_28, %c0_29] : memref<8x128xf32, #tpu.memory_space<vmem>>, vector<8x128xf32>
    tpu.vector_store %arg4[%c0_28, %c0_29], %38 {strides = array<i32>} : memref<8x128xf32, #tpu.memory_space<vmem>>, vector<8x128xf32>,
    return
  }
  func.func @transform_0(%arg0: i32) -> (i32, i32) {
    %c0_i32 = arith.constant 0 : i32
    %c0_i32_0 = arith.constant 0 : i32
    return %arg0, %c0_i32 : i32, i32
  }
  func.func @transform_1(%arg0: i32) -> (i32, i32, i32) {
    %c0_i32 = arith.constant 0 : i32
    %c0_i32_0 = arith.constant 0 : i32
    %c0_i32_1 = arith.constant 0 : i32
    %c0_i32_2 = arith.constant 0 : i32
    return %c0_i32, %c0_i32_0, %c0_i32_1 : i32, i32, i32
  }
  func.func @transform_2(%arg0: i32) -> (i32, i32, i32) {
    %c0_i32 = arith.constant 0 : i32
    %c0_i32_0 = arith.constant 0 : i32
    %c0_i32_1 = arith.constant 0 : i32
    %c0_i32_2 = arith.constant 0 : i32
    return %c0_i32, %c0_i32_0, %c0_i32_1 : i32, i32, i32
  }
  func.func @transform_3(%arg0: i32) -> (i32, i32) {
    %c0_i32 = arith.constant 0 : i32
    %c0_i32_0 = arith.constant 0 : i32
    return %arg0, %c0_i32 : i32, i32
  }
}

</mosaic_0001>

<bundles_post_ra>
// kernel: dqn_forward.1
= control target key start
LH: loop header
LB: loop body
LE: loop exit
PB: predicated region body
PF: predicated region fallthrough
CT: control target
= control target key end

     0   :  { %8 = vsyncpa [#allocation3], 0  ;;  %s633_s12 = smov [#allocation2]   ;;  %s713_s0 = inlined_call_operand.vmem [shape: bf16[8,32], index: 0, kind: input, shape index: {}]   ;;  %s714_s1 = inlined_call_operand.hbm [shape: bf16[4,128,128], index: 1, kind: input, shape index: {}]   ;;  %s715_s2 = inlined_call_operand.vmem [shape: f32[4,1,128], index: 2, kind: input, shape index: {}]   ;;  %s716_s3 = inlined_call_operand.vmem [shape: f32[8,128], index: 3, kind: output, shape index: {}]  }
   0x1   :  { %s16_s13 = sshll.u32 %s633_s12, 4  ;;  %s17_s13 = int_to_ptr.vmem [resolvable:$true] %s16_s13 }
   0x2   :  { %s619_s14 = scalar_lea.vmem %s17_s13, 4096  ;;  %p624_p1 = scmp.lt.s32.totalorder %s17_s13, %s17_s13 }
   0x3   :  { %p620_p0 = scmp.ne.s32.totalorder %s17_s13, %s619_s14  ;;  %p625_p2 = scmp.lt.s32.totalorder %s619_s14, %s619_s14 }
   0x5   :  { %p626_p3 = por %p625_p2, %p624_p1 }
   0x7   :  { %p627_p4 = pnand %p626_p3, %p620_p0 }
   0x9   :  { %630 = shalt.err (!%p627_p4)
}
   0xa   :  { %s634_s15 = smov 64   ;;  %s635_s16 = smov 4  }
   0xb   :  { %22 = dma.hbm_to_vmem [thread:$0]  %s714_s1, 4096, %s17_s13, [#allocation3], %s634_s15, %s634_s15, %s635_s16  }
   0xc   :  { %631 = dma.done.wait [#allocation3], 4096  }
   0xd   :  { %632 = vsyncadd [#allocation3], 4294963200  ;;  %v636_v0 = vmov 0.0   ;;  %vm637_vm0 = vmmov 0   ;;  %v585_v1 = vld [vmem:[#allocation2 + $0x8] sm:$0xff]   ;;  %v586_v2 = vld [vmem:[#allocation2] sm:$0xff]  }
   0xe   :  { %512 = vmatprep.subr.bf16.mxu0 %v636_v0  ;;  %516 = vmatprep.mubr.msk.bf16.mxu0 %vm637_vm0, %v636_v0  ;;  %v587_v3 = vld [vmem:[#allocation2 + $0x78] sm:$0xff]   ;;  %vm53_vm1 = vcmask 261120   ;;  %v588_v4 = vld [vmem:[#allocation2 + $0x70] sm:$0xff]   ;;  %v29_v5 = vld [vmem:[%s713_s0] sm:$0xf] }
   0xf   :  { %520 = vmatprep.subr.bf16.mxu1 %v636_v0  ;;  %536 = vmatprep.mubr.msk.bf16.mxu1 %vm637_vm0, %v636_v0  ;;  %v589_v6 = vld [vmem:[#allocation2 + $0x68] sm:$0xff]   ;;  %v590_v7 = vld [vmem:[#allocation2 + $0x60] sm:$0xff]   ;;  %v591_v8 = vld [vmem:[#allocation2 + $0x58] sm:$0xff]  }
  0x10   :  { %513 = vmatpush3.bf16.msra.mxu0 %v585_v1  ;;  %521 = vmatpush3.bf16.msra.mxu1 %v587_v3  ;;  %v592_v9 = vld [vmem:[#allocation2 + $0x50] sm:$0xff]   ;;  %v593_v10 = vld [vmem:[#allocation2 + $0x48] sm:$0xff]   ;;  %v594_v11 = vld [vmem:[#allocation2 + $0x40] sm:$0xff]  }
  0x11   :  { %514 = vmatprep.subr.bf16.mxu0 %v636_v0  ;;  %522 = vmatprep.subr.bf16.mxu1 %v636_v0  ;;  %v595_v12 = vld [vmem:[#allocation2 + $0xb8] sm:$0xff]   ;;  %v596_v13 = vld [vmem:[#allocation2 + $0xb0] sm:$0xff]   ;;  %v597_v14 = vld [vmem:[#allocation2 + $0xa8] sm:$0xff]  }
  0x12   :  { %v598_v15 = vld [vmem:[#allocation2 + $0xa0] sm:$0xff]   ;;  %v599_v16 = vld [vmem:[#allocation2 + $0x98] sm:$0xff]   ;;  %v600_v17 = vld [vmem:[#allocation2 + $0x90] sm:$0xff]  }
  0x13   :  { %v448_v18 = vld [vmem:[%s715_s2] ss:$0 sm:$0xff]  ;;  %v601_v26 = vld [vmem:[#allocation2 + $0x88] sm:$0xff]   ;;  %v603_v28 = vld [vmem:[#allocation2 + $0xf8] sm:$0xff]  }
  0x14   :  { %515 = vmatpush3.bf16.msra.mxu0 %v586_v2  ;;  %523 = vmatpush3.bf16.msra.mxu1 %v588_v4  ;;  %v602_v27 = vld [vmem:[#allocation2 + $0x80] sm:$0xff]   ;;  %v604_v29 = vld [vmem:[#allocation2 + $0xf0] sm:$0xff]   ;;  %v605_v30 = vld [vmem:[#allocation2 + $0xe8] sm:$0xff]  }
  0x15   :  { %540 = vmatprep.subr.bf16.mxu0 %v636_v0  ;;  %524 = vmatprep.subr.bf16.mxu1 %v636_v0  ;;  %v606_v31 = vld [vmem:[#allocation2 + $0xe0] sm:$0xff]   ;;  %v607_v32 = vld [vmem:[#allocation2 + $0xd8] sm:$0xff]   ;;  %v608_v33 = vld [vmem:[#allocation2 + $0xd0] sm:$0xff]  }
  0x16   :  { %v453_v34 = vld [vmem:[%s715_s2 + $0x1] ss:$0 sm:$0xff]  ;;  %v609_v42 = vld [vmem:[#allocation2 + $0xc8] sm:$0xff]   ;;  %v463_v44 = vld [vmem:[%s715_s2 + $0x2] ss:$0 sm:$0xff] }
  0x17   :  { %517 = vmatmul.mubr.msk.bf16.vlgmr.msra.gmra.mxu0 %vm53_vm1, %v29_v5  ;;  %v610_v43 = vld [vmem:[#allocation2 + $0xc0] sm:$0xff]  }
  0x18   :  { %556 = vmatprep.mubr.msk.bf16.mxu0 %vm637_vm0, %v636_v0  ;;  %525 = vmatpush3.bf16.msra.mxu1 %v589_v6  ;;  %v473_v52 = vld [vmem:[%s715_s2 + $0x3] ss:$0 sm:$0xff] }
  0x19   :  { %526 = vmatprep.subr.bf16.mxu1 %v636_v0  ;;  %541 = vmatpush3.bf16.msra.mxu0 %v595_v12 }
  0x1a   :  { %542 = vmatprep.subr.bf16.mxu0 %v636_v0 }
  0x1c   :  { %527 = vmatpush3.bf16.msra.mxu1 %v590_v7 }
  0x1d   :  { %528 = vmatprep.subr.bf16.mxu1 %v636_v0  ;;  %543 = vmatpush3.bf16.msra.mxu0 %v596_v13 }
  0x1e   :  { %544 = vmatprep.subr.bf16.mxu0 %v636_v0 }
  0x20   :  { %529 = vmatpush3.bf16.msra.mxu1 %v591_v8 }
  0x21   :  { %530 = vmatprep.subr.bf16.mxu1 %v636_v0  ;;  %545 = vmatpush3.bf16.msra.mxu0 %v597_v14 }
  0x22   :  { %546 = vmatprep.subr.bf16.mxu0 %v636_v0 }
  0x24   :  { %531 = vmatpush3.bf16.msra.mxu1 %v592_v9 }
  0x25   :  { %532 = vmatprep.subr.bf16.mxu1 %v636_v0  ;;  %547 = vmatpush3.bf16.msra.mxu0 %v598_v15 }
  0x26   :  { %548 = vmatprep.subr.bf16.mxu0 %v636_v0 }
  0x28   :  { %533 = vmatpush3.bf16.msra.mxu1 %v593_v10 }
  0x29   :  { %534 = vmatprep.subr.bf16.mxu1 %v636_v0  ;;  %549 = vmatpush3.bf16.msra.mxu0 %v599_v16 }
  0x2a   :  { %550 = vmatprep.subr.bf16.mxu0 %v636_v0 }
  0x2c   :  { %535 = vmatpush3.bf16.msra.mxu1 %v594_v11 }
  0x2d   :  { %560 = vmatprep.subr.bf16.mxu1 %v636_v0  ;;  %551 = vmatpush3.bf16.msra.mxu0 %v600_v17 }
  0x2e   :  { %552 = vmatprep.subr.bf16.mxu0 %v636_v0 }
  0x31   :  { %553 = vmatpush3.bf16.msra.mxu0 %v601_v26 }
  0x32   :  { %554 = vmatprep.subr.bf16.mxu0 %v636_v0 }
  0x35   :  { %555 = vmatpush3.bf16.msra.mxu0 %v602_v27 }
  0xd7   :  { %v91_v19 = vpop.f32.mrf.mxu0 }
  0xd8   :  { %v92_v20 = vadd.f32 %v448_v18, %v91_v19 }
  0xd9   :  { %v518_v21 = vpop.f32.mrf.mxu0 }
  0xda   :  { %v97_v22 = vmax.f32 %v92_v20, 0.0 }
  0xdb   :  { %v94_v23 = vpop.f32.mrf.mxu0 }
  0xdc   :  { %v98_v24 = vpack.c.bf16 %v97_v22, %v97_v22 }
  0xdd   :  { %v519_v25 = vpop.f32.mrf.mxu0 }
  0xde   :  { %537 = vmatmul.mubr.bf16.vlgmr.msra.gmra.mxu1 %v98_v24 }
  0xdf   :  { %576 = vmatprep.mubr.msk.bf16.mxu1 %vm637_vm0, %v636_v0  ;;  %561 = vmatpush3.bf16.msra.mxu1 %v603_v28 }
  0xe0   :  { %562 = vmatprep.subr.bf16.mxu1 %v636_v0 }
  0xe3   :  { %563 = vmatpush3.bf16.msra.mxu1 %v604_v29 }
  0xe4   :  { %564 = vmatprep.subr.bf16.mxu1 %v636_v0 }
  0xe7   :  { %565 = vmatpush3.bf16.msra.mxu1 %v605_v30 }
  0xe8   :  { %566 = vmatprep.subr.bf16.mxu1 %v636_v0 }
  0xeb   :  { %567 = vmatpush3.bf16.msra.mxu1 %v606_v31 }
  0xec   :  { %568 = vmatprep.subr.bf16.mxu1 %v636_v0 }
  0xef   :  { %569 = vmatpush3.bf16.msra.mxu1 %v607_v32 }
  0xf0   :  { %570 = vmatprep.subr.bf16.mxu1 %v636_v0 }
  0xf3   :  { %571 = vmatpush3.bf16.msra.mxu1 %v608_v33 }
  0xf4   :  { %572 = vmatprep.subr.bf16.mxu1 %v636_v0 }
  0xf7   :  { %573 = vmatpush3.bf16.msra.mxu1 %v609_v42 }
  0xf8   :  { %574 = vmatprep.subr.bf16.mxu1 %v636_v0 }
  0xfb   :  { %575 = vmatpush3.bf16.msra.mxu1 %v610_v43 }
 0x19e   :  { %v206_v35 = vpop.f32.mrf.mxu1 }
 0x19f   :  { %v207_v36 = vadd.f32 %v453_v34, %v206_v35 }
 0x1a0   :  { %v538_v37 = vpop.f32.mrf.mxu1 }
 0x1a1   :  { %v212_v38 = vmax.f32 %v207_v36, 0.0 }
 0x1a2   :  { %v209_v39 = vpop.f32.mrf.mxu1 }
 0x1a3   :  { %v213_v40 = vpack.c.bf16 %v212_v38, %v212_v38 }
 0x1a4   :  { %v539_v41 = vpop.f32.mrf.mxu1 }
 0x1a5   :  { %557 = vmatmul.mubr.bf16.vlgmr.msra.gmra.mxu0 %v213_v40 }
 0x265   :  { %v321_v45 = vpop.f32.mrf.mxu0 }
 0x266   :  { %v322_v46 = vadd.f32 %v463_v44, %v321_v45 }
 0x267   :  { %v558_v47 = vpop.f32.mrf.mxu0 }
 0x268   :  { %v327_v48 = vmax.f32 %v322_v46, 0.0 }
 0x269   :  { %v324_v49 = vpop.f32.mrf.mxu0 }
 0x26a   :  { %v328_v50 = vpack.c.bf16 %v327_v48, %v327_v48 }
 0x26b   :  { %v559_v51 = vpop.f32.mrf.mxu0 }
 0x26c   :  { %577 = vmatmul.mubr.bf16.vlgmr.msra.gmra.mxu1 %v328_v50 }
 0x32c   :  { %v436_v53 = vpop.f32.mrf.mxu1 }
 0x32d   :  { %v437_v54 = vadd.f32 %v473_v52, %v436_v53 }
 0x32e   :  { %v578_v55 = vpop.f32.mrf.mxu1 }
 0x32f   :  { %442 = vst [vmem:[%s716_s3] sm:$0xff] %v437_v54 }
 0x330   :  { %v439_v56 = vpop.f32.mrf.mxu1 }
 0x332   :  { %v579_v57 = vpop.f32.mrf.mxu1 }
 0x333   :  { %447 = vsyncpa [#allocation3], 1 }

</bundles_post_ra>
